<compile_context>
chip_gen: v5e
topology: v5e:2x2
jax: 0.10.0
libtpu: 0.0.40
codegen_flags: <defaults>
</compile_context>

<pallas_src>
import functools

import jax
import jax.numpy as jnp
from jax.experimental import pallas as pl
from jax.experimental.pallas import tpu as pltpu

_LANE = 128


def _round_up(v, m):
    return -(-v // m) * m


def _sublane(dtype):
    # Sublane tile height for a dtype: 8 for 4-byte, 16 for 2-byte, 32 for 1-byte.
    return max(8, 32 // jnp.dtype(dtype).itemsize)


def _tpu_plan_params():
    """Return (vmem_capacity, fused_budget, vmem_limit_cap, multi_tc_likely)."""
    try:
        cap = int(pltpu.get_tpu_info().vmem_capacity_bytes)
    except Exception:
        cap = 64 * 1024 * 1024          # conservative (v7x-class) if query unavailable
    if cap >= 100 * 1024 * 1024:
        # v5e / v6e class: 128 MiB VMEM per TensorCore, 1 TC per chip.
        return cap, 80 * 1024 * 1024, 96 * 1024 * 1024, False
    # v7x class: 64 MiB VMEM per TensorCore, 2 TCs per chip -> tighter cap with explicit
    # headroom for the resident weight buffers and Mosaic internal scratch.
    return cap, 36 * 1024 * 1024, 40 * 1024 * 1024, True


def _vmem_limit_bytes(pipelined_bytes, cap):
    return int(min(pipelined_bytes + (8 << 20), cap))


# ---------------------------------------------------------------------------
# Plan 1: fused multi-sample kernel (pool + excitation + gate in one pass over x).
# ---------------------------------------------------------------------------
def _se_fused_kernel(x_ref, w1t_ref, w2t_ref, o_ref, *, inv_hw):
    # x_ref, o_ref: (n_b, C, HW)   w1t_ref: (C, Cr) = fc1.weight.T   w2t_ref: (Cr, C)
    # Squeeze: lane-axis sum with f32 accumulation; the 1/(H*W) mean normalization is a
    # tiny VPU multiply on the pooled (n_b, C) vector (weights stay in native dtype, no
    # re-rounding of bf16 weights).
    pooled = jnp.sum(x_ref[...], axis=-1, dtype=jnp.float32) * inv_hw        # (n_b, C)
    # Excitation in row form: N = n_b, so the MXU sees a real N dimension.
    h = jnp.dot(pooled, w1t_ref[...].astype(jnp.float32),
                preferred_element_type=jnp.float32)                          # (n_b, Cr)
    h = jnp.maximum(h, 0.0)
    y = jnp.dot(h, w2t_ref[...].astype(jnp.float32),
                preferred_element_type=jnp.float32)                          # (n_b, C)
    gate = jnp.clip((y + 3.0) * (1.0 / 6.0), 0.0, 1.0)                       # (n_b, C)
    # Scale: re-read x from VMEM (keeps the multi-MB block out of long-lived vregs across
    # the pool -> matmul -> hardsigmoid chain) and lane-broadcast the per-(sample,channel)
    # gate; multiply in x's dtype (no full-size f32 copy of the activation block).
    o_ref[...] = x_ref[...] * gate[:, :, None].astype(o_ref.dtype)


# ---------------------------------------------------------------------------
# Plan 2: streaming elementwise gating kernel (pool + excitation left to XLA).
# ---------------------------------------------------------------------------
def _se_scale_kernel(x_ref, g_ref, o_ref):
    # x_ref, o_ref: (C, t_hw)   g_ref: (C, 1) f32
    o_ref[...] = x_ref[...] * g_ref[...].astype(o_ref.dtype)


def se_module(x_nchw, w1, w2, *, fused_vmem_budget=None):
    """SEModule forward.

    x_nchw: (B, C, H, W) NCHW activations (any float dtype).
    w1: fc1.weight, shape (Cr, C)   (torch.nn.Linear(C, Cr, bias=False))
    w2: fc2.weight, shape (C, Cr)   (torch.nn.Linear(Cr, C, bias=False))
    Returns (B, C, H, W) in x's dtype.
    """
    B, C, H, W = x_nchw.shape
    Cr = w1.shape[0]
    HW = H * W
    x_dt = jnp.dtype(x_nchw.dtype)
    x_itemsize = x_dt.itemsize
    x_flat = x_nchw.reshape(B, C, HW)

    _, default_budget, limit_cap, multi_tc = _tpu_plan_params()
    budget = default_budget if fused_vmem_budget is None else int(fused_vmem_budget)

    # In-VMEM footprint uses the tile-padded sizes (C rounded to the dtype sublane tile,
    # HW rounded to 128) even though no host-side padding is ever done.
    C_pad = _round_up(C, _sublane(x_dt))
    HW_pad = _round_up(HW, _LANE)
    per_sample_bytes = C_pad * HW_pad * x_itemsize

    w_dt = jnp.dtype(w1.dtype)
    w_sub = _sublane(w_dt)
    w_bytes = (_round_up(C, w_sub) * _round_up(Cr, _LANE)
               + _round_up(Cr, w_sub) * _round_up(C, _LANE)) * w_dt.itemsize

    # Double-buffered input + output blocks (+ conservatively double-buffered resident
    # weights) must fit the budget.
    avail_for_x = budget - 2 * w_bytes
    max_nb = avail_for_x // (4 * per_sample_bytes) if per_sample_bytes > 0 else 0

    use_fused = max_nb >= 1
    if use_fused and multi_tc and B == 1 and HW_pad >= 8 * _LANE:
        # v7x: a 1-step batch grid would serialize the whole layer on one TensorCore and
        # lose in/out pipelining; the spatially tiled Plan 2 keeps both cores streaming.
        use_fused = False

    if use_fused:
        # ---- Plan 1: one pass over x, pipelined over batch blocks of n_b samples. ----
        n_b = int(min(B, max_nb))
        if multi_tc and B >= 2:
            n_b = min(n_b, -(-B // 2))      # keep >= 2 grid steps for both v7x cores
        n_b = max(1, n_b)
        grid_b = -(-B // n_b)

        w1t = jnp.asarray(w1).T             # (C, Cr), native dtype
        w2t = jnp.asarray(w2).T             # (Cr, C), native dtype
        pipelined = 4 * n_b * per_sample_bytes + 2 * w_bytes

        out_flat = pl.pallas_call(
            functools.partial(_se_fused_kernel, inv_hw=1.0 / HW),
            out_shape=jax.ShapeDtypeStruct((B, C, HW), x_nchw.dtype),
            grid_spec=pltpu.PrefetchScalarGridSpec(
                num_scalar_prefetch=0,
                grid=(grid_b,),
                in_specs=[
                    # Last two block dims equal the full array dims -> legal even when
                    # HW % 128 != 0; only the tail vregs of each row are masked.
                    pl.BlockSpec((n_b, C, HW), lambda g: (g, 0, 0)),
                    pl.BlockSpec((C, Cr), lambda g: (0, 0)),   # resident across grid
                    pl.BlockSpec((Cr, C), lambda g: (0, 0)),   # resident across grid
                ],
                out_specs=pl.BlockSpec((n_b, C, HW), lambda g: (g, 0, 0)),
            ),
            compiler_params=pltpu.CompilerParams(
                dimension_semantics=("parallel",),
                vmem_limit_bytes=_vmem_limit_bytes(pipelined, limit_cap),
            ),
        )(x_flat, w1t, w2t)
        return out_flat.reshape(B, C, H, W)

    # ---- Plan 2: pool + tiny excitation matmuls in XLA, streaming gate kernel. ----
    pooled = jnp.mean(x_flat.astype(jnp.float32), axis=-1)                     # (B, C)
    h = jnp.maximum(pooled @ jnp.asarray(w1, jnp.float32).T, 0.0)              # (B, Cr)
    gate = jnp.clip((h @ jnp.asarray(w2, jnp.float32).T + 3.0) * (1.0 / 6.0),
                    0.0, 1.0)                                                  # (B, C)
    gate = gate.reshape(B, C, 1)

    # Largest lane-multiple spatial tile whose double-buffered in+out fits the budget,
    # preferring >= 512-lane tiles (needed to approach the HBM roofline).
    max_lanes = max(_LANE,
                    (max(budget, 0) // (4 * C_pad * x_itemsize)) // _LANE * _LANE)
    if max_lanes >= HW_pad:
        t_hw = HW                                    # whole spatial row (full-dim block)
    elif max_lanes >= 4 * _LANE:
        t_hw = (max_lanes // (4 * _LANE)) * (4 * _LANE)
    else:
        t_hw = max_lanes
    n_hw = -(-HW // t_hw)                            # ragged last tile handled by masking

    x_spec = pl.BlockSpec((None, C, t_hw), lambda b, s: (b, 0, s))
    if t_hw <= 2 * _LANE:
        # Small tiles leave DMA setup latency exposed under 2-deep buffering.
        try:
            x_spec = pl.BlockSpec((None, C, t_hw), lambda b, s: (b, 0, s),
                                  pipeline_mode=pl.Buffered(3))
        except TypeError:
            pass    # older BlockSpec signature: fall back to default double buffering

    scale_pipelined = 5 * C_pad * t_hw * x_itemsize + B * C_pad * 4

    out_flat = pl.pallas_call(
        _se_scale_kernel,
        out_shape=jax.ShapeDtypeStruct((B, C, HW), x_nchw.dtype),
        grid_spec=pltpu.PrefetchScalarGridSpec(
            num_scalar_prefetch=0,
            grid=(B, n_hw),
            in_specs=[
                x_spec,
                pl.BlockSpec((None, C, 1), lambda b, s: (b, 0, 0)),
            ],
            out_specs=pl.BlockSpec((None, C, t_hw), lambda b, s: (b, 0, s)),
        ),
        compiler_params=pltpu.CompilerParams(
            dimension_semantics=("parallel", "parallel"),
            vmem_limit_bytes=_vmem_limit_bytes(scale_pipelined, limit_cap),
        ),
    )(x_flat, gate)
    return out_flat.reshape(B, C, H, W)


def _reference(x, w1, w2):
    # Pure-JAX reference mirroring the PyTorch SEModule.
    xf = x.astype(jnp.float32)
    pooled = jnp.mean(xf, axis=(2, 3))                                   # (B, C)
    h = jnp.maximum(pooled @ jnp.asarray(w1, jnp.float32).T, 0.0)        # (B, Cr)
    y = jnp.clip((h @ jnp.asarray(w2, jnp.float32).T + 3.0) / 6.0, 0.0, 1.0)
    return (xf * y[:, :, None, None]).astype(x.dtype)


if __name__ == "__main__":
    # Small, module-consistent shapes; H*W = 225 is deliberately NOT a multiple of 128 to
    # exercise the unpadded full-row Plan-1 path (the common case in the real backbone).
    B, C, H, W = 4, 16, 15, 15
    reduction = 4
    Cr = max(1, C // reduction)

    key = jax.random.PRNGKey(0)
    kx, k1, k2 = jax.random.split(key, 3)

    x = jax.random.normal(kx, (B, C, H, W), dtype=jnp.float32)
    # Weight shapes match nn.Linear(C, Cr, bias=False) / nn.Linear(Cr, C, bias=False).
    w1 = 0.1 * jax.random.normal(k1, (Cr, C), dtype=jnp.float32)
    w2 = 0.1 * jax.random.normal(k2, (C, Cr), dtype=jnp.float32)

    ref = _reference(x, w1, w2)

    # Plan 1: fused multi-sample kernel (default path for these shapes).
    out_fused = jax.block_until_ready(se_module(x, w1, w2))
    assert out_fused.shape == (B, C, H, W)
    assert jnp.allclose(out_fused, ref, atol=1e-5, rtol=1e-5), "fused path mismatch"

    # Plan 2: force the two-pass fallback (streaming gate kernel) so both on-device
    # code paths are exercised and verified.
    out_split = jax.block_until_ready(se_module(x, w1, w2, fused_vmem_budget=0))
    assert out_split.shape == (B, C, H, W)
    assert jnp.allclose(out_split, ref, atol=1e-5, rtol=1e-5), "two-pass path mismatch"

    print("KERNEL_OK")
</pallas_src>

<mosaic_0001>
module attributes {stable_mosaic.version = 11 : i64} {
  func.func @_se_fused_kernel(%arg0: i32, %arg1: memref<2x16x225xf32, #tpu.memory_space<vmem>>, %arg2: memref<16x4xf32, #tpu.memory_space<vmem>>, %arg3: memref<4x16xf32, #tpu.memory_space<vmem>>, %arg4: memref<2x16x225xf32, #tpu.memory_space<vmem>>) attributes {dimension_semantics = [#tpu.dimension_semantics<parallel>], iteration_bounds = array<i64: 2>, scalar_prefetch = 0 : i64, scratch_operands = 0 : i64, tpu.core_type = #tpu.core_type<tc>, window_params = [{transform_indices = @transform_0, window_bounds = array<i64: 2, 16, 225>}, {pipeline_mode = #tpu.pipeline_mode<synchronous>, transform_indices = @transform_1, window_bounds = array<i64: 16, 4>}, {pipeline_mode = #tpu.pipeline_mode<synchronous>, transform_indices = @transform_2, window_bounds = array<i64: 4, 16>}, {transform_indices = @transform_3, window_bounds = array<i64: 2, 16, 225>}]} {
    %c0 = arith.constant 0 : index
    %c0_0 = arith.constant 0 : index
    %c0_1 = arith.constant 0 : index
    %0 = vector.load %arg1[%c0, %c0_0, %c0_1] : memref<2x16x225xf32, #tpu.memory_space<vmem>>, vector<2x16x225xf32>
    %cst = arith.constant dense<0.000000e+00> : vector<2x16xf32>
    %1 = vector.multi_reduction <add>, %0, %cst [2] : vector<2x16x225xf32> to vector<2x16xf32>
    %cst_2 = arith.constant 0.00444444455 : f32
    %2 = vector.broadcast %cst_2 : f32 to vector<2x16xf32>
    %3 = arith.mulf %1, %2 : vector<2x16xf32>
    %c0_3 = arith.constant 0 : index
    %c0_4 = arith.constant 0 : index
    %4 = vector.load %arg2[%c0_3, %c0_4] : memref<16x4xf32, #tpu.memory_space<vmem>>, vector<16x4xf32>
    %cst_5 = arith.constant dense<0.000000e+00> : vector<2x4xf32>
    %5 = tpu.matmul %3, %4, %cst_5 {dimension_numbers = #tpu.dot_dimension_numbers<[1], [0], [0], [1], [0, 0, 1, 1], [], []>} : vector<2x16xf32>, vector<16x4xf32>, vector<2x4xf32> -> vector<2x4xf32>
    %cst_6 = arith.constant 0.000000e+00 : f32
    %6 = vector.broadcast %cst_6 : f32 to vector<2x4xf32>
    %7 = arith.maximumf %5, %6 : vector<2x4xf32>
    %c0_7 = arith.constant 0 : index
    %c0_8 = arith.constant 0 : index
    %8 = vector.load %arg3[%c0_7, %c0_8] : memref<4x16xf32, #tpu.memory_space<vmem>>, vector<4x16xf32>
    %cst_9 = arith.constant dense<0.000000e+00> : vector<2x16xf32>
    %9 = tpu.matmul %7, %8, %cst_9 {dimension_numbers = #tpu.dot_dimension_numbers<[1], [0], [0], [1], [0, 0, 1, 1], [], []>} : vector<2x4xf32>, vector<4x16xf32>, vector<2x16xf32> -> vector<2x16xf32>
    %cst_10 = arith.constant 3.000000e+00 : f32
    %10 = vector.broadcast %cst_10 : f32 to vector<2x16xf32>
    %11 = arith.addf %9, %10 : vector<2x16xf32>
    %cst_11 = arith.constant 0.166666672 : f32
    %12 = vector.broadcast %cst_11 : f32 to vector<2x16xf32>
    %13 = arith.mulf %11, %12 : vector<2x16xf32>
    %cst_12 = arith.constant 0.000000e+00 : f32
    %cst_13 = arith.constant 1.000000e+00 : f32
    %14 = vector.broadcast %cst_12 : f32 to vector<2x16xf32>
    %15 = arith.maximumf %14, %13 : vector<2x16xf32>
    %16 = vector.broadcast %cst_13 : f32 to vector<2x16xf32>
    %17 = arith.minimumf %16, %15 : vector<2x16xf32>
    %c0_14 = arith.constant 0 : index
    %c0_15 = arith.constant 0 : index
    %c0_16 = arith.constant 0 : index
    %18 = vector.load %arg1[%c0_14, %c0_15, %c0_16] : memref<2x16x225xf32, #tpu.memory_space<vmem>>, vector<2x16x225xf32>
    %19 = vector.shape_cast %17 : vector<2x16xf32> to vector<2x16x1xf32>
    %20 = vector.broadcast %19 : vector<2x16x1xf32> to vector<2x16x225xf32>
    %21 = arith.mulf %18, %20 : vector<2x16x225xf32>
    %c0_17 = arith.constant 0 : index
    %c0_18 = arith.constant 0 : index
    %c0_19 = arith.constant 0 : index
    %22 = vector.load %arg4[%c0_17, %c0_18, %c0_19] : memref<2x16x225xf32, #tpu.memory_space<vmem>>, vector<2x16x225xf32>
    tpu.vector_store %arg4[%c0_17, %c0_18, %c0_19], %21 {strides = array<i32>} : memref<2x16x225xf32, #tpu.memory_space<vmem>>, vector<2x16x225xf32>,
    return
  }
  func.func @transform_0(%arg0: i32) -> (i32, i32, i32) {
    %c0_i32 = arith.constant 0 : i32
    %c0_i32_0 = arith.constant 0 : i32
    %c0_i32_1 = arith.constant 0 : i32
    return %arg0, %c0_i32, %c0_i32_0 : i32, i32, i32
  }
  func.func @transform_1(%arg0: i32) -> (i32, i32) {
    %c0_i32 = arith.constant 0 : i32
    %c0_i32_0 = arith.constant 0 : i32
    %c0_i32_1 = arith.constant 0 : i32
    return %c0_i32, %c0_i32_0 : i32, i32
  }
  func.func @transform_2(%arg0: i32) -> (i32, i32) {
    %c0_i32 = arith.constant 0 : i32
    %c0_i32_0 = arith.constant 0 : i32
    %c0_i32_1 = arith.constant 0 : i32
    return %c0_i32, %c0_i32_0 : i32, i32
  }
  func.func @transform_3(%arg0: i32) -> (i32, i32, i32) {
    %c0_i32 = arith.constant 0 : i32
    %c0_i32_0 = arith.constant 0 : i32
    %c0_i32_1 = arith.constant 0 : i32
    return %arg0, %c0_i32, %c0_i32_0 : i32, i32, i32
  }
}

</mosaic_0001>

<bundles_post_ra>
// kernel: tpu_custom_call.1
= control target key start
LH: loop header
LB: loop body
LE: loop exit
PB: predicated region body
PF: predicated region fallthrough
CT: control target
= control target key end

     0   :  { %8 = vsyncpa [#allocation3], 0  ;;  %s809_s0 = inlined_call_operand.hbm [shape: f32[4,16,225], index: 0, kind: input, shape index: {}]   ;;  %s810_s1 = inlined_call_operand.vmem [shape: f32[16,4], index: 1, kind: input, shape index: {}]   ;;  %s811_s2 = inlined_call_operand.vmem [shape: f32[4,16], index: 2, kind: input, shape index: {}]   ;;  %s812_s3 = inlined_call_operand.hbm [shape: f32[4,16,225], index: 3, kind: output, shape index: {}]  }
   0x1   :  { %10 = vsyncpa [#allocation3 + $0x1], 0 }
   0x2   :  { %11 = vsyncpa [#allocation4], 0 }
   0x3   :  { %13 = vsyncpa [#allocation4 + $0x1], 0  ;;  %s629_s12 = smov 0   ;;  %s631_s13 = smov 0  }
   0x4   :  { %s633_s14 = smov 0   ;;  %s635_s15 = smov 0  }
   0x5 LB: > { %s650_s16 = sadd.s32 4294967295, %s603_s15   ;;  %s429_s17 = sadd.s32 4294967294, %s603_s15   ;;  %s603_s15 = sphi %s635_s15, %s822_s15   ;;  %s599_s14 = sphi %s633_s14, %s821_s14   ;;  %s595_s13 = sphi %s631_s13, %s820_s13   ;;  %s591_s12 = sphi %s629_s12, %s819_s12  }
   0x6   : > { %s654_s18 = sadd.s32 1, %s603_s15   ;;  %s26_s19 = sadd.s32 1, %s599_s14 }
   0x7   : > { %s23_s20 = ssub.s32 %s603_s15, %s654_s18  ;;  %p33_p0 = scmp.ne.s32.totalorder %s599_s14, %s595_s13 }
   0x8   : > { %p24_p1 = scmp.eq.s32.totalorder %s23_s20, 0  ;;  %p34_p2 = scmp.eq.s32.totalorder %s603_s15, 0 }
   0x9   : > { %p39_p3 = scmp.ne.s32.totalorder %s595_s13, %s591_s12  ;;  %p40_p4 = scmp.eq.s32.totalorder %s650_s16, 0 }
   0xa   : > { %s666_s21 = scalar_select %p24_p1, %s599_s14, %s26_s19  }
   0xb   : > { %p668_p5 = por %p34_p2, %p33_p0  ;;  %p672_p6 = por %p40_p4, %p39_p3 }
   0xc   : > { %p105_p7 = scmp.eq.s32.totalorder %s650_s16, 1  ;;  %p111_p8 = scmp.eq.s32.totalorder %s429_s17, 1 }
   0xd   : > { %p464_p10 = scmp.lt.s32.totalorder %s603_s15, 2  ;;  %s137_s26 = sand.u32 1, %s599_s14  }
   0xe   : > { %p679_p11 = por %p105_p7, %p33_p0  ;;  %p683_p12 = por %p111_p8, %p39_p3 }
   0xf   : > { %s449_s27 = sshll.u32 %s603_s15, 6  ;;  %s432_s28 = sshll.u32 %s137_s26, 6 }
  0x10   : > { %s147_s4 = scalar_lea.hbm %s809_s0, %s449_s27  ;;  %s141_s6 = scalar_lea.vmem [#allocation2], %s432_s28 }
  0x11   : > { %s148_s5 = sshll.u32 %s147_s4, 4  ;;  %s150_s7 = sshll.u32 %s141_s6, 4  ;;  %s149_s5 = int_to_ptr.hbm [resolvable:$true] %s148_s5  ;;  %s151_s7 = int_to_ptr.vmem [resolvable:$true] %s150_s7 }
  0x12   : > { %p694_p13 = pnand %p464_p10, %p668_p5  ;;  %p436_p0 = scmp.ge.s32.totalorder %s603_s15, 1 }
  0x13   : > { %p158_p1 = scmp.lt.s32.totalorder %s603_s15, 3  ;;  %s138_s9 = scalar_lea.sflag [#allocation3], %s137_s26 }
  0x14   : > { %s507_s10 = sshra.s32 %s149_s5, 4  ;;  %p511_p3 = pneg %p694_p13  ;;  %s508_s10 = int_to_ptr.hbm [resolvable:$true] %s507_s10 }
  0x15   : > { %s509_s11 = scalar_lea.hbm %s508_s10, 64  ;;  %s514_s20 = scalar_lea.hbm %s809_s0, 128 }
  0x16   : > { %p510_p2 = scmp.ne.s32.totalorder %s508_s10, %s509_s11  ;;  %p515_p5 = scmp.lt.s32.totalorder %s508_s10, %s809_s0 }
  0x17   : > { %p516_p8 = scmp.lt.s32.totalorder %s514_s20, %s509_s11 }
  0x18   : > { %p512_p4 = pnand %p511_p3, %p510_p2 }
  0x19   : > { %p517_p10 = por %p516_p8, %p515_p5 }
  0x1a   : > { %p513_p7 = pneg %p512_p4 }
  0x1c   : > { %p518_p9 = pnand %p517_p10, %p513_p7 }
  0x1e   : > { %521 = shalt.err (!%p518_p9)
}
  0x1f   : > { %s605_s26 = smov 256   ;;  %s606_s28 = smov 16  }
  0x20   : > { %459 = dma.hbm_to_vmem [thread:$0]  (!%p694_p13), %s149_s5, 1024, %s151_s7, %s138_s9, %s605_s26, %s605_s26, %s606_s28  }
  0x21   : > { %p159_p2 = pnand %p436_p0, %p158_p1 }
  0x22   : > { %s715_s29 = sand.u32 (!%p159_p2), 1, %s595_s13  }
  0x23   : > { %162 = sbr.rel (%p159_p2) target bundleno = 564 (0x234), region = 32  ;;  %s437_s30 = sshll.u32 (!%p159_p2), %s715_s29, 6 }
  0x24   : > { %s165_s4 = scalar_lea.sflag (!%p159_p2), [#allocation3], %s715_s29  ;;  %s168_s6 = scalar_lea.vmem (!%p159_p2), [#allocation2], %s437_s30 }
  0x28   : > { %582 = dma.done.wait (%p672_p6), %s165_s4, 1024  }
  0x29   : > { %584 = vsyncadd (%p672_p6), %s165_s4, 4294966272  ;;  %vm202_vm0 = vcmask 793600   ;;  %v725_v0 = vld [vmem:[%s168_s6 + $0x20] sm:$0xff]  ;;  %v727_v1 = vld [vmem:[%s168_s6 + $0x28] sm:$0xff]  ;;  %v229_v19 = vlaneseq  ;;  %vm234_vm1 = vcmask 130112   ;;  %vm239_vm2 = vcmask 1041409  }
  0x2a   : > { %v729_v2 = vld [vmem:[%s168_s6] sm:$0xff]  ;;  %v211_v3 = vsel %vm202_vm0, %v727_v1, 0.0  ;;  %v733_v4 = vld [vmem:[%s168_s6 + $0x8] sm:$0xff]  ;;  %v738_v7 = vld [vmem:[%s168_s6 + $0x38] sm:$0xff]  ;;  %vm241_vm3 = vcmask 130048   ;;  %vm270_vm4 = vcmask 1043456  }
  0x2b   : > { %v212_v5 = vadd.f32 %v211_v3, %v725_v0  ;;  %v203_v6 = vsel %vm202_vm0, %v733_v4, 0.0  ;;  %v741_v9 = vld [vmem:[%s168_s6 + $0x18] sm:$0xff]  ;;  %v743_v10 = vld [vmem:[%s168_s6 + $0x30] sm:$0xff]  ;;  %v215_v11 = vsel %vm202_vm0, %v738_v7, 0.0  ;;  %v224_v16 = vld [vmem:[%s810_s1 + $0x8] sm:$0xff]  ;;  %v230_v21 = vand.u32 127, %v229_v19 }
  0x2c   : > { %v204_v8 = vadd.f32 %v203_v6, %v729_v2  ;;  %v747_v12 = vld [vmem:[%s168_s6 + $0x10] sm:$0xff]  ;;  %v207_v13 = vsel %vm202_vm0, %v741_v9, 0.0  ;;  %v216_v14 = vadd.f32 %v215_v11, %v743_v10  ;;  %v223_v17 = vld [vmem:[%s810_s1] sm:$0xff]  ;;  %258 = vmatpush.msra.mxu0 %v224_v16  ;;  %vm266_vm5 = vcmask 31744   ;;  %s191_s11 = scalar_lea.vmem [#allocation5], %s437_s30  ;;  %s451_s17 = sshll.u32 %s650_s16, 6 }
  0x2d   : > { %213 = vadd.xlane.f32.xlu1 %v212_v5  ;;  %v208_v15 = vadd.f32 %v207_v13, %v747_v12  ;;  %v232_v23 = vadd.s32 4294967288, %v230_v21  ;;  %v265_v36 = vld [vmem:[%s811_s2] sm:$0xf]  ;;  %v299_v39 = vshrl.u32 %v229_v19, 7  ;;  %s352_s22 = scalar_lea.hbm %s812_s3, %s451_s17  ;;  %s353_s27 = sshll.u32 %s191_s11, 4  ;;  %s354_s27 = int_to_ptr.vmem [resolvable:$true] %s353_s27 }
  0x2e   : > { %205 = vadd.xlane.f32.xlu0 %v204_v8  ;;  %259 = vmatpush.msra.mxu0 %v223_v17  ;;  %s355_s26 = sshll.u32 %s352_s22, 4  ;;  %s340_s16 = scalar_lea.sflag [#allocation4], %s715_s29  ;;  %s356_s26 = int_to_ptr.hbm [resolvable:$true] %s355_s26 }
  0x2f   : > { %440 = vmatpush.msk.msra.mxu1 %vm270_vm4, %v265_v36  ;;  %504 = vset.pattern.permute.xlu0 %v299_v39  ;;  %v306_v40 = vadd.s32 8, %v299_v39  ;;  %s551_s28 = sshra.s32 %s356_s26, 4  ;;  %s557_s23 = scalar_lea.hbm %s812_s3, 128  ;;  %s552_s28 = int_to_ptr.hbm [resolvable:$true] %s551_s28 }
  0x30   : > { %502 = vset.pattern.permute.xlu2 %v299_v39  ;;  %s553_s30 = scalar_lea.hbm %s552_s28, 64  ;;  %p558_p0 = scmp.lt.s32.totalorder %s552_s28, %s812_s3 }
  0x31   : > { %505 = vset.pattern.permute.xlu1 %v306_v40  ;;  %p554_p6 = scmp.ne.s32.totalorder %s552_s28, %s553_s30  ;;  %p559_p1 = scmp.lt.s32.totalorder %s557_s23, %s553_s30 }
  0x33   : > { %p555_p9 = pnand %p554_p6, %p679_p11  ;;  %p560_p3 = por %p559_p1, %p558_p0 }
  0x35   : > { %217 = vadd.xlane.f32.xlu1 %v216_v14  ;;  %p556_p13 = pneg %p555_p9 }
  0x36   : > { %209 = vadd.xlane.f32.xlu0 %v208_v15 }
  0x37   : > { %p561_p4 = pnand %p560_p3, %p556_p13 }
  0xa0   : > { %v214_v18 = vpop.xlane.xlu1 %213 }
  0xa1   : > { %v206_v20 = vpop.xlane.xlu0 %205  ;;  %v221_v22 = vmul.f32 0.0044444446, %v214_v18 }
  0xa2   : > { %v219_v24 = vmul.f32 0.0044444446, %v206_v20 }
  0xa3   : > { %v236_v29 = vperm.slane %v221_v22, %v230_v21 }
  0xa4   : > { %v231_v31 = vperm.slane %v219_v24, %v230_v21 }
  0xa8   : > { %v218_v25 = vpop.xlane.xlu1 %217 }
  0xa9   : > { %v222_v26 = vmul.f32 0.0044444446, %v218_v25  ;;  %v210_v27 = vpop.xlane.xlu0 %209 }
  0xaa   : > { %v220_v28 = vmul.f32 0.0044444446, %v210_v27 }
  0xab   : > { %v237_v30 = vperm.slane %v222_v26, %v232_v23 }
  0xac   : > { %v233_v32 = vperm.slane %v220_v28, %v232_v23 }
  0xad   : > { %v238_v33 = vsel %vm234_vm1, %v237_v30, %v236_v29 }
  0xae   : > { %v235_v34 = vsel %vm234_vm1, %v233_v32, %v231_v31 }
  0xaf   : > { %v240_v35 = vsel %vm239_vm2, %v238_v33, %v235_v34 }
  0xb0   : > { %439 = vmatmul.msk.f32.vlgmr.msra.gmra.mxu0 %vm241_vm3, %v240_v35 }
 0x12d   : > { %v261_v37 = vpop.f32.mrf.mxu0 }
 0x12e   : > { %v264_v38 = vmax.f32 %v261_v37, 0.0 }
 0x130   : > { %441 = vmatmul.msk.f32.vlgmr.msra.gmra.mxu1 %vm266_vm5, %v264_v38 }
 0x1ad   : > { %v291_v41 = vpop.f32.mrf.mxu1 }
 0x1ae   : > { %v292_v42 = vadd.f32 3.0, %v291_v41 }
 0x1b0   : > { %v294_v43 = vmul.f32 0.16666667, %v292_v42 }
 0x1b2   : > { %v295_v44 = vmax.f32 %v294_v43, 0.0 }
 0x1b4   : > { %v296_v45 = vmin.f32 %v295_v44, 1.0 }
 0x1b6   : > { %v310_v46 = vperm.slane %v296_v45, 1  ;;  %v297_v47 = vperm.slane %v296_v45, 0 }
 0x1b8   : > { %321 = vperm.xlu1 %505, %v310_v46   ;;  %315 = vperm.xlu0 %504, %v310_v46  }
 0x1b9   : > { %302 = vperm.xlu2 %502, %v297_v47  }
 0x1c0   : > { %506 = vset.pattern.permute.xlu0 %v306_v40 }
 0x1c1   : > { %503 = vset.pattern.permute.xlu2 %v306_v40 }
 0x1c9   : > { %308 = vperm.xlu2 %503, %v297_v47  }
 0x213   : > { %v303_v48 = vpop.permute.xlu2 %302 }
 0x214   : > { %v323_v49 = vmul.f32 %v303_v48, %v729_v2  ;;  %v324_v50 = vmul.f32 %v303_v48, %v733_v4 }
 0x216   : > { %331 = vst [vmem:[%s191_s11] sm:$0xff] %v323_v49 }
 0x217   : > { %332 = vst.msk [vmem:[%s191_s11 + $0x8] sm:$0xff] %vm202_vm0, %v324_v50 }
 0x223   : > { %v309_v51 = vpop.permute.xlu2 %308 }
 0x224   : > { %v325_v52 = vmul.f32 %v309_v51, %v747_v12  ;;  %v326_v53 = vmul.f32 %v309_v51, %v741_v9 }
 0x226   : > { %333 = vst [vmem:[%s191_s11 + $0x10] sm:$0xff] %v325_v52 }
 0x227   : > { %334 = vst.msk [vmem:[%s191_s11 + $0x18] sm:$0xff] %vm202_vm0, %v326_v53 }
 0x22a   : > { %v322_v54 = vpop.permute.xlu1 %321  ;;  %v316_v55 = vpop.permute.xlu0 %315 }
 0x22b   : > { %v329_v56 = vmul.f32 %v322_v54, %v743_v10  ;;  %v330_v57 = vmul.f32 %v322_v54, %v738_v7  ;;  %v327_v58 = vmul.f32 %v316_v55, %v725_v0  ;;  %v328_v59 = vmul.f32 %v316_v55, %v727_v1 }
 0x22d   : > { %337 = vst [vmem:[%s191_s11 + $0x30] sm:$0xff] %v329_v56 }
 0x22e   : > { %338 = vst.msk [vmem:[%s191_s11 + $0x38] sm:$0xff] %vm202_vm0, %v330_v57 }
 0x22f   : > { %335 = vst [vmem:[%s191_s11 + $0x20] sm:$0xff] %v327_v58 }
 0x230   : > { %336 = vst.msk [vmem:[%s191_s11 + $0x28] sm:$0xff] %vm202_vm0, %v328_v59 }
 0x231   : > { %564 = shalt.err (!%p561_p4)
}
 0x232   : > { %s607_s29 = smov 256   ;;  %s608_s8 = smov 16  }
 0x233   : > { %454 = dma.vmem_to_hbm [thread:$0]  (%p679_p11), %s354_s27, 1024, %s356_s26, %s340_s16, %s607_s29, %s607_s29, %s608_s8  }
 0x234 PF: > { %s370_s9 = sand.u32 1, %s591_s12   ;;  %p818_p7 = scmp.ge.s32.totalorder %s603_s15, 2 }
 0x235   : > { %s371_s10 = scalar_lea.sflag [#allocation4], %s370_s9 }
 0x236   : > { %p461_p5 = pnand %p818_p7, %p683_p12 }
 0x238   : > { %p462_p8 = pneg %p461_p5 }
 0x23a   : > { %586 = dma.done.wait (%p462_p8), %s371_s10, 1024  }
 0x23b   : > { %588 = vsyncadd (%p462_p8), %s371_s10, 4294966272  ;;  %p16_p10 = scmp.ge.s32.totalorder %s654_s18, 4   ;;  %s819_s12 = smov %s595_s13 }
 0x23c   : > { %s820_s13 = smov %s599_s14  ;;  %s821_s14 = smov %s666_s21 }
 0x23d   : > { %s822_s15 = smov %s654_s18  ;;  %18 = sbr.rel (!%p16_p10) target bundleno = 5 (0x5), region = 77 }
 0x242   :  { %377 = vsyncpa [#allocation3], 1 }
 0x243   :  { %379 = vsyncpa [#allocation3 + $0x1], 1 }
 0x244   :  { %380 = vsyncpa [#allocation4], 1 }
 0x245   :  { %382 = vsyncpa [#allocation4 + $0x1], 1 }

</bundles_post_ra>
